<compile_context>
chip_gen: v6e
topology: v6e:2x2x1
jax: 0.10.0
libtpu: 0.0.40
codegen_flags: <defaults>
</compile_context>

<pallas_src>
import math
from functools import partial

import numpy as np
import jax
import jax.numpy as jnp
from jax import lax
from jax.experimental import pallas as pl
from jax.experimental.pallas import tpu as pltpu

LN_EPS = 1e-5  # nn.LayerNorm default


def _round_up(x, m):
    return (x + m - 1) // m * m


def _patch_embed_kernel(p_ref, w_ref, b_ref, g_ref, beta_ref, o_ref, *, embed_dim):
    # p_ref: (TILE_N, Kdim_pad) bf16     w_ref: (Kdim_pad, E_pad) bf16
    # b_ref/g_ref/beta_ref: (1, E_pad) f32 (zero in padded columns)
    # o_ref: (TILE_N, E_pad) out dtype
    y = jnp.dot(p_ref[...], w_ref[...], preferred_element_type=jnp.float32)
    y = y + b_ref[...]                       # conv bias; padded cols stay exactly 0

    # LayerNorm over the *real* embed_dim columns.  Padded columns of y are 0,
    # so the plain sum / embed_dim mean is exact; the centered pass masks the
    # padded columns so variance is the true two-pass (y - mean)^2 statistic.
    inv_e = 1.0 / float(embed_dim)
    mean = jnp.sum(y, axis=-1, keepdims=True) * inv_e
    col = lax.broadcasted_iota(jnp.int32, y.shape, dimension=1)
    d = jnp.where(col < embed_dim, y - mean, 0.0)
    var = jnp.sum(d * d, axis=-1, keepdims=True) * inv_e
    inv_std = lax.rsqrt(var + LN_EPS)
    o_ref[...] = (d * inv_std * g_ref[...] + beta_ref[...]).astype(o_ref.dtype)


def overlap_patch_embed(x, conv_w, conv_b, ln_g, ln_b, *, patch_size, stride,
                        tile_n=1024, matmul_dtype=jnp.bfloat16, out_dtype=None):
    """x: (B, C, H, W) NCHW. conv_w: (E, C, K, K). Returns (out (B, N, E), Ho, Wo)."""
    B, C, H, W = x.shape
    E = conv_w.shape[0]
    K = patch_size
    pad = K // 2
    Ho = (H + 2 * pad - K) // stride + 1
    Wo = (W + 2 * pad - K) // stride + 1
    N = Ho * Wo
    Kdim = C * K * K
    out_dtype = x.dtype if out_dtype is None else out_dtype
    out_bytes = np.dtype(out_dtype).itemsize

    # Lane-dense / MXU-friendly padded sizes.
    E_pad = _round_up(E, 128)
    Kdim_pad = _round_up(Kdim, 128)
    # bf16 packs 16 rows per vreg -> keep small-N tiles a multiple of 16.
    TILE_N = tile_n if N >= tile_n else _round_up(N, 16)

    # Keep double-buffered per-step VMEM comfortably inside every generation's
    # budget (v7x: 64 MiB physical); shrink TILE_N only if a late-stage shape
    # (huge Kdim_pad) would blow it.
    def _vmem_need(t):
        return 2 * (t * Kdim_pad * 2            # bf16 patch tile
                    + Kdim_pad * E_pad * 2      # bf16 weight
                    + 3 * E_pad * 4             # bias / gamma / beta rows
                    + t * E_pad * out_bytes)    # output tile
    VMEM_BUDGET = 48 << 20
    while _vmem_need(TILE_N) > VMEM_BUDGET and TILE_N > 256:
        TILE_N //= 2

    N_pad = _round_up(N, TILE_N)
    rows = B * N_pad                 # flattened (batch, patches) row axis
    n_tiles = rows // TILE_N

    # ---- glue: im2col in NHWC, ordering (kh, kw, c), built in bf16 ----------
    # TODO(synk): fuse im2col into the kernel via manual overlapping-window DMA
    # (memory_space=pl.ANY + make_async_copy) to remove the pat HBM round-trip.
    xh = jnp.transpose(x, (0, 2, 3, 1))                        # (B, H, W, C)
    xh = jnp.pad(xh, ((0, 0), (pad, pad), (pad, pad), (0, 0)))
    xh = xh.astype(matmul_dtype)                               # cast BEFORE concat
    cols = []
    for kh in range(K):
        for kw in range(K):
            cols.append(xh[:, kh:kh + stride * (Ho - 1) + 1:stride,
                              kw:kw + stride * (Wo - 1) + 1:stride, :])  # (B,Ho,Wo,C)
    pat = jnp.concatenate(cols, axis=-1).reshape(B, N, Kdim)   # (B, N, C*K*K) bf16
    pat = jnp.pad(pat, ((0, 0), (0, N_pad - N), (0, Kdim_pad - Kdim)))
    pat = pat.reshape(rows, Kdim_pad)

    # Weight: (E, C, K, K) -> rows ordered (kh, kw, c) to match the patches.
    w_mat = jnp.transpose(conv_w, (2, 3, 1, 0)).reshape(Kdim, E)
    w_mat = jnp.pad(w_mat, ((0, Kdim_pad - Kdim), (0, E_pad - E))).astype(matmul_dtype)

    def _row(v):
        return jnp.pad(v.astype(jnp.float32).reshape(1, E), ((0, 0), (0, E_pad - E)))
    b_row, g_row, beta_row = _row(conv_b), _row(ln_g), _row(ln_b)

    cost = pl.CostEstimate(
        flops=2 * rows * Kdim_pad * E_pad,
        transcendentals=rows,  # one rsqrt per output row
        bytes_accessed=(rows * Kdim_pad * 2 + Kdim_pad * E_pad * 2
                        + 3 * E_pad * 4 + rows * E_pad * out_bytes),
    )
    vmem_limit = int(min(56 << 20, max(32 << 20, 2 * _vmem_need(TILE_N))))

    kernel = partial(_patch_embed_kernel, embed_dim=E)
    out = pl.pallas_call(
        kernel,
        out_shape=jax.ShapeDtypeStruct((rows, E_pad), out_dtype),
        grid_spec=pltpu.PrefetchScalarGridSpec(
            num_scalar_prefetch=0,
            grid=(n_tiles,),
            in_specs=[
                pl.BlockSpec((TILE_N, Kdim_pad), lambda i: (i, 0)),
                pl.BlockSpec((Kdim_pad, E_pad), lambda i: (0, 0)),
                pl.BlockSpec((1, E_pad), lambda i: (0, 0)),
                pl.BlockSpec((1, E_pad), lambda i: (0, 0)),
                pl.BlockSpec((1, E_pad), lambda i: (0, 0)),
            ],
            out_specs=pl.BlockSpec((TILE_N, E_pad), lambda i: (i, 0)),
        ),
        compiler_params=pltpu.CompilerParams(
            dimension_semantics=("parallel",),
            vmem_limit_bytes=vmem_limit),
        cost_estimate=cost,
    )(pat, w_mat, b_row, g_row, beta_row)

    out = out.reshape(B, N_pad, E_pad)[:, :N, :E]   # already in out_dtype; no extra cast
    return out, Ho, Wo


def _reference(x, conv_w, conv_b, ln_g, ln_b, *, patch_size, stride):
    pad = patch_size // 2
    y = lax.conv_general_dilated(
        x, conv_w, window_strides=(stride, stride),
        padding=((pad, pad), (pad, pad)),
        dimension_numbers=("NCHW", "OIHW", "NCHW"))
    y = y + conv_b[None, :, None, None]
    B, E, Ho, Wo = y.shape
    y = y.reshape(B, E, Ho * Wo).transpose(0, 2, 1)
    mean = jnp.mean(y, axis=-1, keepdims=True)
    var = jnp.mean((y - mean) ** 2, axis=-1, keepdims=True)
    y = (y - mean) / jnp.sqrt(var + LN_EPS)
    return y * ln_g + ln_b, Ho, Wo


if __name__ == "__main__":
    # Small shapes consistent with the module: img=16, patch=7, stride=4,
    # in_chans=4, embed_dim=32  ->  Ho = Wo = 4, num_patches = 16.
    B, C, Himg, Wimg = 2, 4, 16, 16
    K, stride, E = 7, 4, 32

    key = jax.random.PRNGKey(0)
    kx, kw = jax.random.split(key)

    x = jax.random.normal(kx, (B, C, Himg, Wimg), dtype=jnp.float32)

    # Deterministic init mirroring _init_weights:
    #   Conv2d: weight ~ N(0, sqrt(2 / fan_out)), bias = 0
    #   LayerNorm: weight = 1, bias = 0
    fan_out = K * K * E
    conv_w = jax.random.normal(kw, (E, C, K, K), dtype=jnp.float32) * math.sqrt(2.0 / fan_out)
    conv_b = jnp.zeros((E,), dtype=jnp.float32)
    ln_g = jnp.ones((E,), dtype=jnp.float32)
    ln_b = jnp.zeros((E,), dtype=jnp.float32)

    out, Ho, Wo = overlap_patch_embed(x, conv_w, conv_b, ln_g, ln_b,
                                      patch_size=K, stride=stride)
    out = jax.block_until_ready(out)

    ref, Hr, Wr = _reference(x, conv_w, conv_b, ln_g, ln_b,
                             patch_size=K, stride=stride)
    assert (Ho, Wo) == (Hr, Wr)
    assert out.shape == (B, Ho * Wo, E)
    # bf16 matmul inputs (f32 accumulation + f32 LayerNorm) -> looser tolerance
    # vs the pure-f32 reference.
    assert jnp.allclose(out, ref, atol=5e-2, rtol=5e-2), \
        float(jnp.max(jnp.abs(out - ref)))

    print("KERNEL_OK")
</pallas_src>

<mosaic_0001>
module attributes {stable_mosaic.version = 11 : i64} {
  func.func @_patch_embed_kernel(%arg0: i32, %arg1: memref<16x256xbf16, #tpu.memory_space<vmem>>, %arg2: memref<256x128xbf16, #tpu.memory_space<vmem>>, %arg3: memref<1x128xf32, #tpu.memory_space<vmem>>, %arg4: memref<1x128xf32, #tpu.memory_space<vmem>>, %arg5: memref<1x128xf32, #tpu.memory_space<vmem>>, %arg6: memref<16x128xf32, #tpu.memory_space<vmem>>) attributes {dimension_semantics = [#tpu.dimension_semantics<parallel>], iteration_bounds = array<i64: 2>, scalar_prefetch = 0 : i64, scratch_operands = 0 : i64, tpu.core_type = #tpu.core_type<tc>, window_params = [{transform_indices = @transform_0, window_bounds = array<i64: 16, 256>}, {pipeline_mode = #tpu.pipeline_mode<synchronous>, transform_indices = @transform_1, window_bounds = array<i64: 256, 128>}, {pipeline_mode = #tpu.pipeline_mode<synchronous>, transform_indices = @transform_2, window_bounds = array<i64: 1, 128>}, {pipeline_mode = #tpu.pipeline_mode<synchronous>, transform_indices = @transform_3, window_bounds = array<i64: 1, 128>}, {pipeline_mode = #tpu.pipeline_mode<synchronous>, transform_indices = @transform_4, window_bounds = array<i64: 1, 128>}, {transform_indices = @transform_5, window_bounds = array<i64: 16, 128>}]} {
    %c0 = arith.constant 0 : index
    %c0_0 = arith.constant 0 : index
    %0 = vector.load %arg1[%c0, %c0_0] : memref<16x256xbf16, #tpu.memory_space<vmem>>, vector<16x256xbf16>
    %c0_1 = arith.constant 0 : index
    %c0_2 = arith.constant 0 : index
    %1 = vector.load %arg2[%c0_1, %c0_2] : memref<256x128xbf16, #tpu.memory_space<vmem>>, vector<256x128xbf16>
    %cst = arith.constant dense<0.000000e+00> : vector<16x128xf32>
    %2 = tpu.matmul %0, %1, %cst {dimension_numbers = #tpu.dot_dimension_numbers<[1], [0], [0], [1], [0, 0, 1, 1], [], []>} : vector<16x256xbf16>, vector<256x128xbf16>, vector<16x128xf32> -> vector<16x128xf32>
    %c0_3 = arith.constant 0 : index
    %c0_4 = arith.constant 0 : index
    %3 = vector.load %arg3[%c0_3, %c0_4] : memref<1x128xf32, #tpu.memory_space<vmem>>, vector<1x128xf32>
    %4 = vector.broadcast %3 : vector<1x128xf32> to vector<16x128xf32>
    %5 = arith.addf %2, %4 : vector<16x128xf32>
    %cst_5 = arith.constant dense<0.000000e+00> : vector<16xf32>
    %6 = vector.multi_reduction <add>, %5, %cst_5 [1] : vector<16x128xf32> to vector<16xf32>
    %7 = vector.shape_cast %6 : vector<16xf32> to vector<16x1xf32>
    %cst_6 = arith.constant 3.125000e-02 : f32
    %8 = vector.broadcast %cst_6 : f32 to vector<16x1xf32>
    %9 = arith.mulf %7, %8 : vector<16x1xf32>
    %10 = tpu.iota {dimensions = array<i32: 1>} : vector<16x128xi32>
    %c32_i32 = arith.constant 32 : i32
    %11 = vector.broadcast %c32_i32 : i32 to vector<16x128xi32>
    %12 = arith.cmpi slt, %10, %11 : vector<16x128xi32>
    %13 = vector.broadcast %9 : vector<16x1xf32> to vector<16x128xf32>
    %14 = arith.subf %5, %13 : vector<16x128xf32>
    %cst_7 = arith.constant 0.000000e+00 : f32
    %15 = vector.broadcast %cst_7 : f32 to vector<16x128xf32>
    %16 = arith.select %12, %14, %15 : vector<16x128xi1>, vector<16x128xf32>
    %17 = arith.mulf %16, %16 : vector<16x128xf32>
    %cst_8 = arith.constant dense<0.000000e+00> : vector<16xf32>
    %18 = vector.multi_reduction <add>, %17, %cst_8 [1] : vector<16x128xf32> to vector<16xf32>
    %19 = vector.shape_cast %18 : vector<16xf32> to vector<16x1xf32>
    %cst_9 = arith.constant 3.125000e-02 : f32
    %20 = vector.broadcast %cst_9 : f32 to vector<16x1xf32>
    %21 = arith.mulf %19, %20 : vector<16x1xf32>
    %cst_10 = arith.constant 9.99999974E-6 : f32
    %22 = vector.broadcast %cst_10 : f32 to vector<16x1xf32>
    %23 = arith.addf %21, %22 : vector<16x1xf32>
    %24 = math.rsqrt %23 : vector<16x1xf32>
    %25 = vector.broadcast %24 : vector<16x1xf32> to vector<16x128xf32>
    %26 = arith.mulf %16, %25 : vector<16x128xf32>
    %c0_11 = arith.constant 0 : index
    %c0_12 = arith.constant 0 : index
    %27 = vector.load %arg4[%c0_11, %c0_12] : memref<1x128xf32, #tpu.memory_space<vmem>>, vector<1x128xf32>
    %28 = vector.broadcast %27 : vector<1x128xf32> to vector<16x128xf32>
    %29 = arith.mulf %26, %28 : vector<16x128xf32>
    %c0_13 = arith.constant 0 : index
    %c0_14 = arith.constant 0 : index
    %30 = vector.load %arg5[%c0_13, %c0_14] : memref<1x128xf32, #tpu.memory_space<vmem>>, vector<1x128xf32>
    %31 = vector.broadcast %30 : vector<1x128xf32> to vector<16x128xf32>
    %32 = arith.addf %29, %31 : vector<16x128xf32>
    %c0_15 = arith.constant 0 : index
    %c0_16 = arith.constant 0 : index
    %33 = vector.load %arg6[%c0_15, %c0_16] : memref<16x128xf32, #tpu.memory_space<vmem>>, vector<16x128xf32>
    tpu.vector_store %arg6[%c0_15, %c0_16], %32 {strides = array<i32>} : memref<16x128xf32, #tpu.memory_space<vmem>>, vector<16x128xf32>,
    return
  }
  func.func @transform_0(%arg0: i32) -> (i32, i32) {
    %c0_i32 = arith.constant 0 : i32
    %c0_i32_0 = arith.constant 0 : i32
    return %arg0, %c0_i32 : i32, i32
  }
  func.func @transform_1(%arg0: i32) -> (i32, i32) {
    %c0_i32 = arith.constant 0 : i32
    %c0_i32_0 = arith.constant 0 : i32
    %c0_i32_1 = arith.constant 0 : i32
    return %c0_i32, %c0_i32_0 : i32, i32
  }
  func.func @transform_2(%arg0: i32) -> (i32, i32) {
    %c0_i32 = arith.constant 0 : i32
    %c0_i32_0 = arith.constant 0 : i32
    %c0_i32_1 = arith.constant 0 : i32
    return %c0_i32, %c0_i32_0 : i32, i32
  }
  func.func @transform_3(%arg0: i32) -> (i32, i32) {
    %c0_i32 = arith.constant 0 : i32
    %c0_i32_0 = arith.constant 0 : i32
    %c0_i32_1 = arith.constant 0 : i32
    return %c0_i32, %c0_i32_0 : i32, i32
  }
  func.func @transform_4(%arg0: i32) -> (i32, i32) {
    %c0_i32 = arith.constant 0 : i32
    %c0_i32_0 = arith.constant 0 : i32
    %c0_i32_1 = arith.constant 0 : i32
    return %c0_i32, %c0_i32_0 : i32, i32
  }
  func.func @transform_5(%arg0: i32) -> (i32, i32) {
    %c0_i32 = arith.constant 0 : i32
    %c0_i32_0 = arith.constant 0 : i32
    return %arg0, %c0_i32 : i32, i32
  }
}

</mosaic_0001>

<bundles_post_ra>
// kernel: tpu_custom_call.1
= control target key start
LH: loop header
LB: loop body
LE: loop exit
PB: predicated region body
PF: predicated region fallthrough
CT: control target
= control target key end

     0   :  { %10 = vsyncpa [#allocation3], 0  ;;  %s1100_s0 = inlined_call_operand.hbm [shape: bf16[32,256], index: 0, kind: input, shape index: {}]   ;;  %s1101_s1 = inlined_call_operand.hbm [shape: bf16[256,128], index: 1, kind: input, shape index: {}]   ;;  %s1102_s2 = inlined_call_operand.vmem [shape: f32[1,128], index: 2, kind: input, shape index: {}]   ;;  %s1103_s3 = inlined_call_operand.vmem [shape: f32[1,128], index: 3, kind: input, shape index: {}]   ;;  %s1104_s4 = inlined_call_operand.vmem [shape: f32[1,128], index: 4, kind: input, shape index: {}]   ;;  %s1105_s5 = inlined_call_operand.hbm [shape: f32[32,128], index: 5, kind: output, shape index: {}]  }
   0x1   :  { %12 = vsyncpa [#allocation3 + $0x1], 0 }
   0x2   :  { %13 = vsyncpa [#allocation6], 0 }
   0x3   :  { %14 = vsyncpa [#allocation4], 0 }
   0x4   :  { %16 = vsyncpa [#allocation4 + $0x1], 0  ;;  %s906_s18 = smov 0   ;;  %s908_s19 = smov 0  }
   0x5   :  { %s910_s20 = smov 0   ;;  %s912_s21 = smov 0  }
   0x6 LB: > { %s927_s22 = sadd.s32 4294967295, %s865_s21   ;;  %s594_s23 = sadd.s32 4294967294, %s865_s21   ;;  %s865_s21 = sphi %s912_s21, %s1127_s21   ;;  %s861_s20 = sphi %s910_s20, %s1126_s20   ;;  %s857_s19 = sphi %s908_s19, %s1125_s19   ;;  %s853_s18 = sphi %s906_s18, %s1124_s18  }
   0x7   : > { %p42_p0 = scmp.ne.s32.totalorder %s857_s19, %s853_s18  ;;  %p1106_p1 = scmp.eq.s32.totalorder %s927_s22, 0 }
   0x8   : > { %p156_p3 = scmp.eq.s32.totalorder %s594_s23, 1  ;;  %p595_p5 = scmp.ge.s32.totalorder %s865_s21, 1 }
   0x9   : > { %p936_p4 = por %p1106_p1, %p42_p0  ;;  %p163_p7 = scmp.lt.s32.totalorder %s865_s21, 3 }
   0xa   : > { %p941_p6 = por %p156_p3, %p42_p0  ;;  %s867_s27 = smov [#allocation5]  }
   0xb   : > { %s1110_s24 = scalar_select %p936_p4, 1, 0 }
   0xc   : > { %s1111_s25 = scalar_select %p941_p6, 1, 0 }
   0xd   : > { %p946_p8 = pnand %p595_p5, %p163_p7  ;;  %s175_s28 = sshll.u32 %s867_s27, 4  ;;  %s176_s28 = int_to_ptr.vmem [resolvable:$true] %s175_s28 }
   0xe   : > { %s960_s30 = sadd.s32 1, %s865_s21   ;;  %s29_s6 = sadd.s32 1, %s861_s20 }
   0xf   : > { %s1112_s26 = scalar_select %p946_p8, 1, 0 }
  0x10   : > { %p665_p9 = pneg %p946_p8  ;;  %s26_s7 = ssub.s32 %s865_s21, %s960_s30 }
  0x11   : > { %s754_s8 = scalar_lea.vmem %s176_s28, 2048  ;;  %p762_p5 = scmp.lt.s32.totalorder %s176_s28, %s176_s28 }
  0x12   : > { %p955_p11 = pnand %p665_p9, %p1106_p1  ;;  %p755_p13 = scmp.ne.s32.totalorder %s176_s28, %s754_s8 }
  0x13   : > { %p763_p7 = scmp.lt.s32.totalorder %s754_s8, %s754_s8 }
  0x14   : > { %p745_p12 = pneg %p955_p11 }
  0x15   : > { %p764_p10 = por %p763_p7, %p762_p5 }
  0x16   : > { %p757_p0 = pnand %p755_p13, %p745_p12 }
  0x18   : > { %p758_p3 = pneg %p757_p0 }
  0x1a   : > { %p765_p2 = pnand %p764_p10, %p758_p3 }
  0x1c   : > { %768 = shalt.err (!%p765_p2)
}
  0x1d   : > { %s868_s9 = smov 64   ;;  %s869_s10 = smov 4  }
  0x1e   : > { %668 = dma.hbm_to_vmem [thread:$0]  (!%p955_p11), %s1101_s1, 2048, %s176_s28, [#allocation6], %s868_s9, %s868_s9, %s869_s10  }
  0x1f   : > { %p27_p9 = scmp.eq.s32.totalorder %s26_s7, 0  ;;  %p36_p12 = scmp.ne.s32.totalorder %s861_s20, %s857_s19 }
  0x20   : > { %p37_p10 = scmp.eq.s32.totalorder %s865_s21, 0  ;;  %p678_p2 = scmp.lt.s32.totalorder %s865_s21, 2 }
  0x21   : > { %s977_s13 = scalar_select %p27_p9, %s861_s20, %s29_s6  }
  0x22   : > { %p38_p13 = por %p37_p10, %p36_p12  ;;  %p1114_p0 = scmp.eq.s32.totalorder %s927_s22, 1 }
  0x23   : > { %s198_s15 = sand.u32 1, %s861_s20   ;;  %s633_s16 = sshll.u32 %s865_s21, 8 }
  0x24   : > { %p981_p3 = por %p1114_p0, %p36_p12  ;;  %s598_s17 = sshll.u32 %s198_s15, 4 }
  0x25   : > { %s990_s29 = scalar_lea.hbm %s1100_s0, %s633_s16  ;;  %s202_s28 = scalar_lea.vmem [#allocation2], %s598_s17 }
  0x26   : > { %s1115_s14 = scalar_select %p981_p3, 1, 0 }
  0x27   : > { %s210_s6 = sshll.u32 %s202_s28, 4  ;;  %p992_p11 = pnand %p678_p2, %p38_p13  ;;  %s996_s6 = int_to_ptr.vmem [resolvable:$true] %s210_s6 }
  0x28   : > { %s998_s8 = scalar_lea.sflag [#allocation3], %s198_s15  ;;  %s769_s9 = scalar_lea.hbm %s990_s29, 256 }
  0x29   : > { %p770_p5 = scmp.ne.s32.totalorder %s990_s29, %s769_s9  ;;  %p771_p7 = pneg %p992_p11 }
  0x2a   : > { %s774_s12 = scalar_lea.hbm %s1100_s0, 512  ;;  %p775_p10 = scmp.lt.s32.totalorder %s990_s29, %s1100_s0 }
  0x2b   : > { %p772_p9 = pnand %p771_p7, %p770_p5  ;;  %p776_p2 = scmp.lt.s32.totalorder %s774_s12, %s769_s9 }
  0x2d   : > { %p773_p12 = pneg %p772_p9  ;;  %p777_p13 = por %p776_p2, %p775_p10 }
  0x2f   : > { %p778_p0 = pnand %p777_p13, %p773_p12 }
  0x31   : > { %781 = shalt.err (!%p778_p0)
}
  0x32   : > { %s782_s15 = scalar_lea.vmem %s996_s6, 256  ;;  %s870_s23 = smov [#allocation2]  }
  0x33   : > { %p783_p1 = scmp.ne.s32.totalorder %s996_s6, %s782_s15  ;;  %s787_s27 = sshll.u32 %s870_s23, 4  ;;  %s788_s27 = int_to_ptr.vmem [resolvable:$false] %s787_s27 }
  0x34   : > { %s789_s28 = scalar_lea.vmem %s788_s27, 512  ;;  %p790_p9 = scmp.lt.s32.totalorder %s996_s6, %s788_s27 }
  0x35   : > { %p785_p6 = pnand %p783_p1, %p771_p7  ;;  %p791_p3 = scmp.lt.s32.totalorder %s789_s28, %s782_s15 }
  0x37   : > { %p786_p5 = pneg %p785_p6  ;;  %p792_p4 = por %p791_p3, %p790_p9 }
  0x39   : > { %p793_p8 = pnand %p792_p4, %p786_p5 }
  0x3b   : > { %796 = shalt.err (!%p793_p8)
}
  0x3c   : > { %s871_s9 = smov 128   ;;  %s872_s10 = smov 8  }
  0x3d   : > { %672 = dma.hbm_to_vmem [thread:$0]  (!%p992_p11), %s990_s29, 256, %s996_s6, %s998_s8, %s871_s9, %s871_s9, %s872_s10  }
  0x3e   : > { %p1117_p1 = scmp.ne.s32.totalorder %s1112_s26, 0 }
  0x3f   : > { %s1022_s11 = sand.u32 (!%p1117_p1), 1, %s857_s19   ;;  %p1118_p4 = scmp.ne.s32.totalorder (!%p1117_p1), %s1110_s24, 0 }
  0x40   : > { %222 = sbr.rel (%p1117_p1) target bundleno = 630 (0x276), region = 40  ;;  %s603_s12 = sshll.u32 (!%p1117_p1), %s1022_s11, 4 }
  0x41   : > { %s225_s16 = scalar_lea.sflag (!%p1117_p1), [#allocation3], %s1022_s11  ;;  %s1028_s17 = scalar_lea.vmem (!%p1117_p1), [#allocation2], %s603_s12 }
  0x45   : > { %840 = dma.done.wait (%p1118_p4), %s225_s16, 256  }
  0x46   : > { %842 = vsyncadd (%p1118_p4), %s225_s16, 4294967040  ;;  %p1119_p6 = scmp.eq.s32.totalorder %s927_s22, 0 }
  0x48   : > { %844 = dma.done.wait (%p1119_p6), [#allocation6], 2048   ;;  %p1120_p8 = pmov %p1119_p6 }
  0x49   : > { %v720_v0 = vld [vmem:[#allocation5 + $0x78] sm:$0xff]   ;;  %v722_v2 = vld [vmem:[#allocation5 + $0x70] sm:$0xff]   ;;  %v724_v4 = vld [vmem:[#allocation5 + $0x68] sm:$0xff]   ;;  %v456_v27 = vlaneseq  ;;  %s634_s15 = sshll.u32 %s927_s22, 8  ;;  %s258_s23 = scalar_lea.vmem [#allocation7], %s603_s12 }
  0x4a   : > { %846 = vsyncadd (%p1120_p8), [#allocation6], 4294965248  ;;  %v721_v1 = vld [vmem:[#allocation5 + $0x38] sm:$0xff]   ;;  %635 = vmatprep.subr.bf16.mxu0 %v720_v0  ;;  %v723_v3 = vld [vmem:[#allocation5 + $0x30] sm:$0xff]   ;;  %s511_s27 = sshll.u32 %s258_s23, 4  ;;  %s1055_s10 = scalar_lea.hbm %s1105_s5, %s634_s15  ;;  %s1057_s27 = int_to_ptr.vmem [resolvable:$true] %s511_s27 }
  0x4b   : > { %636 = vmatpush3.bf16.msra.mxu0 %v721_v1  ;;  %v725_v5 = vld [vmem:[#allocation5 + $0x28] sm:$0xff]   ;;  %v726_v6 = vld [vmem:[#allocation5 + $0x60] sm:$0xff]   ;;  %v728_v8 = vld [vmem:[#allocation5 + $0x58] sm:$0xff]   ;;  %v457_v28 = vand.u32 127, %v456_v27  ;;  %s498_s16 = scalar_lea.sflag [#allocation4], %s1022_s11  ;;  %p1121_p11 = scmp.ne.s32.totalorder %s1115_s14, 0 }
  0x4c   : > { %637 = vmatprep.subr.bf16.mxu0 %v722_v2  ;;  %v727_v7 = vld [vmem:[#allocation5 + $0x20] sm:$0xff]   ;;  %v729_v9 = vld [vmem:[#allocation5 + $0x18] sm:$0xff]   ;;  %v730_v10 = vld [vmem:[#allocation5 + $0x50] sm:$0xff]   ;;  %s873_s22 = smov [#allocation7]  }
  0x4d   : > { %v738_v11 = vld [vmem:[%s1028_s17 + $0x4] ss:$8 sps:$4 sm:$0xff]   ;;  %v736_v17 = vld [vmem:[%s1028_s17] ss:$8 sps:$4 sm:$0xff]   ;;  %vm458_vm0 = vcmp.lt.s32.totalorder %v457_v28, 32  ;;  %s797_s17 = scalar_lea.vmem %s1057_s27, 256 }
  0x4e   : > { %v731_v12 = vld [vmem:[#allocation5 + $0x10] sm:$0xff]   ;;  %441 = vmatprep.mubr.bf16.mxu0 %v738_v11  ;;  %v732_v13 = vld [vmem:[#allocation5 + $0x48] sm:$0xff]   ;;  %v734_v15 = vld [vmem:[#allocation5 + $0x40] sm:$0xff]   ;;  %p798_p3 = scmp.ne.s32.totalorder %s1057_s27, %s797_s17  ;;  %s801_s12 = sshll.u32 %s873_s22, 4  ;;  %s802_s12 = int_to_ptr.vmem [resolvable:$false] %s801_s12 }
  0x4f   : > { %638 = vmatpush3.bf16.msra.mxu0 %v723_v3  ;;  %v733_v14 = vld [vmem:[#allocation5 + $0x8] sm:$0xff]   ;;  %v735_v16 = vld [vmem:[#allocation5] sm:$0xff]   ;;  %s803_s24 = scalar_lea.vmem %s802_s12, 512  ;;  %p804_p10 = scmp.lt.s32.totalorder %s1057_s27, %s802_s12 }
  0x50   : > { %639 = vmatprep.subr.bf16.mxu0 %v724_v4  ;;  %v606_v20 = vld [vmem:[%s1102_s2] ss:$0 sm:$0xff]  ;;  %p799_p7 = pnand %p798_p3, %p1121_p11  ;;  %p805_p2 = scmp.lt.s32.totalorder %s803_s24, %s797_s17 }
  0x51   : > { %v625_v46 = vld [vmem:[%s1103_s3] ss:$0 sm:$0xff] }
  0x52   : > { %v626_v48 = vld [vmem:[%s1104_s4] ss:$0 sm:$0xff]  ;;  %p800_p12 = pneg %p799_p7  ;;  %p806_p13 = por %p805_p2, %p804_p10 }
  0x53   : > { %640 = vmatpush3.bf16.msra.mxu0 %v725_v5 }
  0x54   : > { %641 = vmatprep.subr.bf16.mxu0 %v726_v6  ;;  %p807_p0 = pnand %p806_p13, %p800_p12 }
  0x57   : > { %642 = vmatpush3.bf16.msra.mxu0 %v727_v7 }
  0x58   : > { %643 = vmatprep.subr.bf16.mxu0 %v728_v8 }
  0x5b   : > { %644 = vmatpush3.bf16.msra.mxu0 %v729_v9 }
  0x5c   : > { %645 = vmatprep.subr.bf16.mxu0 %v730_v10 }
  0x5f   : > { %646 = vmatpush3.bf16.msra.mxu0 %v731_v12 }
  0x60   : > { %647 = vmatprep.subr.bf16.mxu0 %v732_v13 }
  0x63   : > { %648 = vmatpush3.bf16.msra.mxu0 %v733_v14 }
  0x64   : > { %649 = vmatprep.subr.bf16.mxu0 %v734_v15 }
  0x67   : > { %650 = vmatpush3.bf16.msra.mxu0 %v735_v16 }
  0x6a   : > { %442 = vmatmul.mubr.bf16.vlgmr.msra.gmra.mxu0 %v736_v17 }
 0x12a   : > { %v651_v18 = vpop.f32.mrf.mxu0 }
 0x12c   : > { %v652_v19 = vpop.f32.mrf.mxu0 }
 0x12d   : > { %v653_v21 = vadd.f32 %v652_v19, %v651_v18 }
 0x12e   : > { %v654_v22 = vpop.f32.mrf.mxu0 }
 0x12f   : > { %v444_v23 = vadd.f32 %v653_v21, %v606_v20 }
 0x130   : > { %v655_v24 = vpop.f32.mrf.mxu0 }
 0x131   : > { %v656_v25 = vadd.f32 %v655_v24, %v654_v22  ;;  %450 = vadd.xlane.f32.xlu0 %v444_v23 }
 0x133   : > { %v447_v26 = vadd.f32 %v656_v25, %v606_v20 }
 0x135   : > { %452 = vadd.xlane.f32.xlu0 %v447_v26 }
 0x1ba   : > { %v451_v29 = vpop.xlane.xlu0 %450 }
 0x1bb   : > { %v454_v30 = vmul.f32 0.03125, %v451_v29 }
 0x1bd   : > { %v459_v31 = vsub.f32 %v444_v23, %v454_v30 }
 0x1be   : > { %v453_v32 = vpop.xlane.xlu0 %452 }
 0x1bf   : > { %v455_v33 = vmul.f32 0.03125, %v453_v32  ;;  %v461_v34 = vsel %vm458_vm0, %v459_v31, 0.0 }
 0x1c0   : > { %v463_v35 = vmul.f32 %v461_v34, %v461_v34 }
 0x1c1   : > { %v460_v36 = vsub.f32 %v447_v26, %v455_v33 }
 0x1c2   : > { %465 = vadd.xlane.f32.xlu1 %v463_v35 }
 0x1c3   : > { %v462_v37 = vsel %vm458_vm0, %v460_v36, 0.0 }
 0x1c4   : > { %v464_v38 = vmul.f32 %v462_v37, %v462_v37 }
 0x1c6   : > { %467 = vadd.xlane.f32.xlu1 %v464_v38 }
 0x24b   : > { %v466_v39 = vpop.xlane.xlu1 %465 }
 0x24c   : > { %v469_v40 = vmul.f32 0.03125, %v466_v39 }
 0x24e   : > { %v471_v41 = vadd.f32 1e-05, %v469_v40 }
 0x24f   : > { %v468_v42 = vpop.xlane.xlu1 %467 }
 0x250   : > { %739 = vrsqrt.f32 %v471_v41  ;;  %v470_v43 = vmul.f32 0.03125, %v468_v42 }
 0x252   : > { %v472_v44 = vadd.f32 1e-05, %v470_v43 }
 0x254   : > { %741 = vrsqrt.f32 %v472_v44 }
 0x25d   : > { %v740_v45 = vpop.eup %739 }
 0x25e   : > { %v475_v47 = vmul.f32 %v740_v45, %v461_v34 }
 0x260   : > { %v484_v49 = vmul.f32 %v625_v46, %v475_v47 }
 0x261   : > { %v742_v50 = vpop.eup %741 }
 0x262   : > { %v493_v51 = vadd.f32 %v626_v48, %v484_v49  ;;  %v476_v52 = vmul.f32 %v742_v50, %v462_v37 }
 0x264   : > { %v485_v53 = vmul.f32 %v625_v46, %v476_v52  ;;  %495 = vst [vmem:[%s258_s23] sm:$0xff] %v493_v51 }
 0x266   : > { %v494_v54 = vadd.f32 %v626_v48, %v485_v53 }
 0x268   : > { %496 = vst [vmem:[%s258_s23 + $0x8] sm:$0xff] %v494_v54 }
 0x269   : > { %810 = shalt.err (!%p807_p0)
}
 0x26a   : > { %s811_s26 = scalar_lea.hbm %s1055_s10, 256  ;;  %s815_s7 = scalar_lea.hbm %s1105_s5, 512 }
 0x26b   : > { %p812_p5 = scmp.ne.s32.totalorder %s1055_s10, %s811_s26  ;;  %p816_p4 = scmp.lt.s32.totalorder %s1055_s10, %s1105_s5 }
 0x26c   : > { %p817_p6 = scmp.lt.s32.totalorder %s815_s7, %s811_s26 }
 0x26d   : > { %p813_p9 = pnand %p812_p5, %p1121_p11 }
 0x26e   : > { %p818_p8 = por %p817_p6, %p816_p4 }
 0x26f   : > { %p814_p1 = pneg %p813_p9 }
 0x271   : > { %p819_p3 = pnand %p818_p8, %p814_p1 }
 0x273   : > { %822 = shalt.err (!%p819_p3)
}
 0x274   : > { %s874_s23 = smov 128   ;;  %s875_s28 = smov 8  }
 0x275   : > { %663 = dma.vmem_to_hbm [thread:$0]  (%p1121_p11), %s1057_s27, 256, %s1055_s10, %s498_s16, %s874_s23, %s874_s23, %s875_s28  }
 0x276 PF: > { %s526_s9 = sand.u32 1, %s853_s18   ;;  %p1122_p7 = scmp.ne.s32.totalorder %s1111_s25, 0 }
 0x277   : > { %p1123_p12 = scmp.ge.s32.totalorder %s865_s21, 2  ;;  %s527_s17 = scalar_lea.sflag [#allocation4], %s526_s9 }
 0x279   : > { %p674_p10 = pnand %p1123_p12, %p1122_p7 }
 0x27b   : > { %p675_p2 = pneg %p674_p10 }
 0x27d   : > { %848 = dma.done.wait (%p675_p2), %s527_s17, 256  }
 0x27e   : > { %850 = vsyncadd (%p675_p2), %s527_s17, 4294967040  ;;  %p19_p13 = scmp.ge.s32.totalorder %s960_s30, 4   ;;  %s1124_s18 = smov %s857_s19 }
 0x27f   : > { %s1125_s19 = smov %s861_s20  ;;  %s1126_s20 = smov %s977_s13 }
 0x280   : > { %s1127_s21 = smov %s960_s30  ;;  %21 = sbr.rel (!%p19_p13) target bundleno = 6 (0x6), region = 89 }
 0x285   :  { %532 = vsyncpa [#allocation3], 1 }
 0x286   :  { %534 = vsyncpa [#allocation3 + $0x1], 1 }
 0x287   :  { %535 = vsyncpa [#allocation6], 1 }
 0x288   :  { %536 = vsyncpa [#allocation4], 1 }
 0x289   :  { %538 = vsyncpa [#allocation4 + $0x1], 1 }

</bundles_post_ra>
